<compile_context>
chip_gen: v7x
topology: tpu7x:2x2x1
jax: 0.10.0
libtpu: 0.0.40
codegen_flags: <defaults>
</compile_context>

<pallas_src>
import functools
import math

import jax
import jax.numpy as jnp
from jax.experimental import pallas as pl
from jax.experimental.pallas import tpu as pltpu


# ---------------------------------------------------------------------------
# Hardware queries (trace-time, Python level; safe fallbacks everywhere).
# ---------------------------------------------------------------------------

def _device_kind() -> str:
    try:
        return jax.devices()[0].device_kind.lower()
    except Exception:
        return ""


def _vmem_capacity_bytes() -> int:
    try:
        return int(pltpu.get_tpu_info().vmem_capacity_bytes)
    except Exception:
        pass
    # Fallback: infer from the device kind string.
    if "v7" in _device_kind():
        return 64 * 1024 * 1024
    return 128 * 1024 * 1024


def _sublane(itemsize: int) -> int:
    # sublane packing requirement: 8 for f32, 16 for bf16, 32 for int8.
    return max(8, 32 // itemsize)


def _pick_tile_rows(n_rows: int, vocab: int, itemsize: int, *,
                    vmem_bytes: int, min_grid_steps: int) -> int:
    """Rows per logits block: byte-budgeted, sublane-rounded, >= min grid steps."""
    sub = _sublane(itemsize)
    n_rounded = ((n_rows + sub - 1) // sub) * sub

    # Per-block budget for the (double-buffered) logits input.  Smaller on
    # 64-MiB-VMEM chips because the kernel expands each block into f32-wide
    # temporaries (cast / exp); larger elsewhere to amortize per-step overhead.
    if vmem_bytes <= 96 * 1024 * 1024:
        target_block_bytes = 4 * 1024 * 1024
    else:
        target_block_bytes = 8 * 1024 * 1024

    tm = target_block_bytes // max(1, vocab * itemsize)   # NOTE: no row cap
    tm = min(tm, n_rounded)

    # Keep at least `min_grid_steps` grid steps (when N allows) so the
    # BlockSpec pipeline can overlap DMA with compute.
    per_step_cap = n_rounded // min_grid_steps
    if per_step_cap >= sub:
        tm = min(tm, per_step_cap)

    return max(sub, (tm // sub) * sub)


# ---------------------------------------------------------------------------
# Kernel
# ---------------------------------------------------------------------------

def _mdm_loss_kernel(logits_ref, labels_ref, part_ref, *,
                     vocab_size, off, on_minus_off, const_c, bf16_fastpath):
    lab = labels_ref[...]                                  # (TM, 1) int32
    valid = lab != 0                                       # padded / masked rows are 0

    x_in = logits_ref[...]                                 # (TM, V) original dtype
    col = jax.lax.broadcasted_iota(jnp.int32, x_in.shape, 1)
    onehot = col == lab                                    # (TM, V) bool

    if bf16_fastpath:
        # Row max and one-hot pick are exact in bf16 (max never rounds; the
        # pick sums exactly one nonzero term).  Native bf16 VALU on v6e/v7x
        # => half the vector work / vreg pressure for these two full-width ops.
        m = jnp.max(x_in, axis=-1, keepdims=True).astype(jnp.float32)
        x_lab = jnp.sum(jnp.where(onehot, x_in, 0.0),
                        axis=-1, keepdims=True).astype(jnp.float32)
        x = x_in.astype(jnp.float32)
    else:
        x = x_in.astype(jnp.float32)
        m = jnp.max(x, axis=-1, keepdims=True)
        x_lab = jnp.sum(jnp.where(onehot, x, 0.0), axis=-1, keepdims=True)

    # log-softmax pieces over the vocab (lane) axis; exp + accumulations in f32.
    z = x - m
    lse = jnp.log(jnp.sum(jnp.exp(z), axis=-1, keepdims=True))     # (TM, 1)
    logp_lab = (x_lab - m) - lse                                   # (TM, 1)

    # kl = C - off * sum_j logp_j - (on - off) * logp[label]
    kl = const_c - on_minus_off * logp_lab
    if off != 0.0:
        # sum_j logp_j = sum_j x_j - V*m - V*lse  (no sum over z materialized).
        sum_x = jnp.sum(x, axis=-1, keepdims=True)                 # f32 accumulate
        sum_logp = (sum_x - vocab_size * m) - vocab_size * lse
        kl = kl - off * sum_logp
    # (off == 0, i.e. label_smoothing == 0, skips the whole vocab-sum path.)

    # Mask invalid / padded / ragged-garbage rows (select, so NaN can't leak).
    kl = jnp.where(valid, kl, 0.0)
    s = jnp.sum(kl)
    c = jnp.sum(valid.astype(jnp.float32))

    # Per-block partials into a lane-dense (1, 8, 128) output block:
    # [0,0,0] = partial KL sum, [0,0,1] = partial valid count, rest 0.
    # (A handful of single-vreg VPU ops per grid step -- negligible.)
    sub_i = jax.lax.broadcasted_iota(jnp.int32, (1, 8, 128), 1)
    lane_i = jax.lax.broadcasted_iota(jnp.int32, (1, 8, 128), 2)
    first_row = sub_i == 0
    part_ref[...] = jnp.where(first_row & (lane_i == 0), s,
                              jnp.where(first_row & (lane_i == 1), c, 0.0))


# ---------------------------------------------------------------------------
# Wrapper
# ---------------------------------------------------------------------------

def mdm_loss(logits: jax.Array, labels: jax.Array,
             label_smoothing: float = 0.1, tile_rows: int | None = None) -> jax.Array:
    """logits: (B, S, V) float (any dtype); labels: (B, S) int. Returns scalar f32."""
    B, S, V = logits.shape
    N = B * S
    x = logits.reshape(N, V)                      # keep original dtype (no upcast)
    lab = labels.reshape(N, 1).astype(jnp.int32)

    itemsize = jnp.dtype(x.dtype).itemsize
    sub = _sublane(itemsize)

    kind = _device_kind()
    vmem_cap = _vmem_capacity_bytes()
    # v7x has 2 TensorCores per chip: give each core >= 2 steps to pipeline.
    min_grid_steps = 4 if "v7" in kind else 2

    if tile_rows is None:
        tm = _pick_tile_rows(N, V, itemsize,
                             vmem_bytes=vmem_cap, min_grid_steps=min_grid_steps)
    else:
        tm = max(sub, ((int(tile_rows) + sub - 1) // sub) * sub)

    G = (N + tm - 1) // tm
    Np = G * tm
    if Np != N:
        # Pad only the tiny labels array; padded rows get label 0 (masked).
        # The big logits tensor is NOT padded; the ragged last tile's garbage
        # rows are masked in-kernel via those zero labels.
        lab = jnp.pad(lab, ((0, Np - N), (0, 0)))

    # Trace-time constants for the algebraic KL form (handles smoothing == 0,
    # which reduces to masked cross-entropy, matching the PyTorch else-branch).
    on = 1.0 - float(label_smoothing)
    off = (float(label_smoothing) / (V - 1)) if label_smoothing > 0 else 0.0
    const_c = 0.0
    if on > 0.0:
        const_c += on * math.log(on)
    if off > 0.0:
        const_c += (V - 1) * off * math.log(off)

    # bf16 fast path only where bf16 VPU exists (v6e / v7x); never on v5e/older.
    bf16_fastpath = (x.dtype == jnp.bfloat16) and ("v6" in kind or "v7" in kind)

    kernel = functools.partial(
        _mdm_loss_kernel, vocab_size=float(V), off=off,
        on_minus_off=on - off, const_c=const_c, bf16_fastpath=bf16_fastpath)

    # VMEM budget derived from the actual capacity (not hard-coded):
    # 96 MiB on 128-MiB chips, 48 MiB on 64-MiB (v7x-class) chips.
    vmem_limit = max(32 * 1024 * 1024,
                     min(3 * vmem_cap // 4, vmem_cap - 16 * 1024 * 1024))

    cost = pl.CostEstimate(
        flops=8 * N * V,
        transcendentals=N * V + 2 * N,
        bytes_accessed=N * V * itemsize + Np * 4 + G * 8 * 128 * 4)

    # NOTE(v7x): "parallel" is the documented megacore sharding request; if
    # measurement shows both TCs are not used, switch this axis to
    # pltpu.CORE_PARALLEL (per-block partials make the axis safely shardable).
    parts = pl.pallas_call(
        kernel,
        out_shape=jax.ShapeDtypeStruct((G, 8, 128), jnp.float32),
        grid_spec=pltpu.PrefetchScalarGridSpec(
            num_scalar_prefetch=0,
            grid=(G,),
            in_specs=[
                pl.BlockSpec((tm, V), lambda i: (i, 0)),
                pl.BlockSpec((tm, 1), lambda i: (i, 0)),
            ],
            out_specs=pl.BlockSpec((1, 8, 128), lambda i: (i, 0, 0)),
        ),
        compiler_params=pltpu.CompilerParams(
            dimension_semantics=("parallel",),
            vmem_limit_bytes=int(vmem_limit)),
        cost_estimate=cost,
    )(x, lab)

    total = jnp.sum(parts[:, 0, 0])
    cnt = jnp.sum(parts[:, 0, 1])
    # batchmean over masked rows; 0.0 when no valid labels (matches PyTorch branch).
    return jnp.where(cnt > 0, total / cnt, jnp.float32(0.0))


# ---------------------------------------------------------------------------
# Pure-JAX reference mirroring the PyTorch module semantics.
# ---------------------------------------------------------------------------

def _mdm_loss_reference(logits, labels, label_smoothing=0.1):
    V = logits.shape[-1]
    x = logits.reshape(-1, V).astype(jnp.float32)
    lab = labels.reshape(-1).astype(jnp.int32)
    valid = (lab != 0).astype(jnp.float32)
    logp = jax.nn.log_softmax(x, axis=-1)
    if label_smoothing > 0:
        off = label_smoothing / (V - 1)
        on = 1.0 - label_smoothing
        t = jnp.full_like(x, off).at[jnp.arange(x.shape[0]), lab].set(on)
        per_row = jnp.sum(t * (jnp.log(t) - logp), axis=-1)
    else:
        per_row = -jnp.take_along_axis(logp, lab[:, None], axis=-1)[:, 0]
    cnt = jnp.sum(valid)
    return jnp.where(cnt > 0, jnp.sum(per_row * valid) / cnt, jnp.float32(0.0))


if __name__ == "__main__":
    key = jax.random.PRNGKey(0)
    k1, k2, k3, k4, k5, k6 = jax.random.split(key, 6)

    # Primary case: bf16 logits (no-upcast path, bf16 fast path on v6e/v7x).
    B, S, V = 2, 8, 32
    logits_bf16 = jax.random.normal(k1, (B, S, V), dtype=jnp.float32).astype(jnp.bfloat16)
    labels = jax.random.randint(k2, (B, S), 0, V, dtype=jnp.int32)

    loss = jax.block_until_ready(mdm_loss(logits_bf16, labels, label_smoothing=0.1))
    ref = _mdm_loss_reference(logits_bf16, labels, label_smoothing=0.1)
    assert jnp.allclose(loss, ref, atol=1e-4, rtol=1e-4), (loss, ref)

    # f32 logits with a ragged last tile (N=20 not a multiple of tile_rows=8).
    B2, S2 = 2, 10
    logits_f32 = jax.random.normal(k3, (B2, S2, V), dtype=jnp.float32)
    labels2 = jax.random.randint(k4, (B2, S2), 0, V, dtype=jnp.int32)
    loss2 = jax.block_until_ready(mdm_loss(logits_f32, labels2, label_smoothing=0.1,
                                           tile_rows=8))
    ref2 = _mdm_loss_reference(logits_f32, labels2, label_smoothing=0.1)
    assert jnp.allclose(loss2, ref2, atol=1e-4, rtol=1e-4), (loss2, ref2)

    # label_smoothing == 0 -> masked cross-entropy branch (vocab-sum path skipped).
    loss3 = jax.block_until_ready(mdm_loss(logits_f32, labels2, label_smoothing=0.0))
    ref3 = _mdm_loss_reference(logits_f32, labels2, label_smoothing=0.0)
    assert jnp.allclose(loss3, ref3, atol=1e-4, rtol=1e-4), (loss3, ref3)

    # Multi-block auto-sized grid (exercises G >= 2 partial-sum combine).
    B4, S4 = 4, 16
    logits4 = jax.random.normal(k5, (B4, S4, V), dtype=jnp.float32)
    labels4 = jax.random.randint(k6, (B4, S4), 0, V, dtype=jnp.int32)
    loss4 = jax.block_until_ready(mdm_loss(logits4, labels4, label_smoothing=0.1))
    ref4 = _mdm_loss_reference(logits4, labels4, label_smoothing=0.1)
    assert jnp.allclose(loss4, ref4, atol=1e-4, rtol=1e-4), (loss4, ref4)

    print("KERNEL_OK")
</pallas_src>

<mosaic_0001>
module attributes {stable_mosaic.version = 11 : i64} {
  func.func @_mdm_loss_kernel(%arg0: i32, %arg1: memref<16x32xbf16, #tpu.memory_space<vmem>>, %arg2: memref<16x1xi32, #tpu.memory_space<vmem>>, %arg3: memref<1x8x128xf32, #tpu.memory_space<vmem>>) attributes {dimension_semantics = [#tpu.dimension_semantics<parallel>], iteration_bounds = array<i64: 1>, scalar_prefetch = 0 : i64, scratch_operands = 0 : i64, tpu.core_type = #tpu.core_type<tc>, window_params = [{transform_indices = @transform_0, window_bounds = array<i64: 16, 32>}, {transform_indices = @transform_1, window_bounds = array<i64: 16, 1>}, {transform_indices = @transform_2, window_bounds = array<i64: 1, 8, 128>}]} {
    %c0 = arith.constant 0 : index
    %c0_0 = arith.constant 0 : index
    %0 = vector.load %arg2[%c0, %c0_0] : memref<16x1xi32, #tpu.memory_space<vmem>>, vector<16x1xi32>
    %c0_i32 = arith.constant 0 : i32
    %1 = vector.broadcast %c0_i32 : i32 to vector<16x1xi32>
    %2 = arith.cmpi ne, %0, %1 : vector<16x1xi32>
    %c0_1 = arith.constant 0 : index
    %c0_2 = arith.constant 0 : index
    %3 = vector.load %arg1[%c0_1, %c0_2] : memref<16x32xbf16, #tpu.memory_space<vmem>>, vector<16x32xbf16>
    %4 = tpu.iota {dimensions = array<i32: 1>} : vector<16x32xi32>
    %5 = vector.broadcast %0 : vector<16x1xi32> to vector<16x32xi32>
    %6 = arith.cmpi eq, %4, %5 : vector<16x32xi32>
    %7 = arith.extf %3 : vector<16x32xbf16> to vector<16x32xf32>
    %cst = arith.constant dense<0xFF800000> : vector<16xf32>
    %8 = vector.multi_reduction <maximumf>, %7, %cst [1] : vector<16x32xf32> to vector<16xf32>
    %9 = vector.shape_cast %8 : vector<16xf32> to vector<16x1xf32>
    %cst_3 = arith.constant 0.000000e+00 : f32
    %10 = vector.broadcast %cst_3 : f32 to vector<16x32xf32>
    %11 = arith.select %6, %7, %10 : vector<16x32xi1>, vector<16x32xf32>
    %cst_4 = arith.constant dense<0.000000e+00> : vector<16xf32>
    %12 = vector.multi_reduction <add>, %11, %cst_4 [1] : vector<16x32xf32> to vector<16xf32>
    %13 = vector.shape_cast %12 : vector<16xf32> to vector<16x1xf32>
    %14 = vector.broadcast %9 : vector<16x1xf32> to vector<16x32xf32>
    %15 = arith.subf %7, %14 : vector<16x32xf32>
    %16 = math.exp %15 : vector<16x32xf32>
    %cst_5 = arith.constant dense<0.000000e+00> : vector<16xf32>
    %17 = vector.multi_reduction <add>, %16, %cst_5 [1] : vector<16x32xf32> to vector<16xf32>
    %18 = vector.shape_cast %17 : vector<16xf32> to vector<16x1xf32>
    %19 = math.log %18 : vector<16x1xf32>
    %20 = arith.subf %13, %9 : vector<16x1xf32>
    %21 = arith.subf %20, %19 : vector<16x1xf32>
    %cst_6 = arith.constant 0.896774172 : f32
    %22 = vector.broadcast %cst_6 : f32 to vector<16x1xf32>
    %23 = arith.mulf %22, %21 : vector<16x1xf32>
    %cst_7 = arith.constant -0.668481708 : f32
    %24 = vector.broadcast %cst_7 : f32 to vector<16x1xf32>
    %25 = arith.subf %24, %23 : vector<16x1xf32>
    %cst_8 = arith.constant dense<0.000000e+00> : vector<16xf32>
    %26 = vector.multi_reduction <add>, %7, %cst_8 [1] : vector<16x32xf32> to vector<16xf32>
    %27 = vector.shape_cast %26 : vector<16xf32> to vector<16x1xf32>
    %cst_9 = arith.constant 3.200000e+01 : f32
    %28 = vector.broadcast %cst_9 : f32 to vector<16x1xf32>
    %29 = arith.mulf %28, %9 : vector<16x1xf32>
    %30 = arith.subf %27, %29 : vector<16x1xf32>
    %cst_10 = arith.constant 3.200000e+01 : f32
    %31 = vector.broadcast %cst_10 : f32 to vector<16x1xf32>
    %32 = arith.mulf %31, %19 : vector<16x1xf32>
    %33 = arith.subf %30, %32 : vector<16x1xf32>
    %cst_11 = arith.constant 0.0032258064 : f32
    %34 = vector.broadcast %cst_11 : f32 to vector<16x1xf32>
    %35 = arith.mulf %34, %33 : vector<16x1xf32>
    %36 = arith.subf %25, %35 : vector<16x1xf32>
    %cst_12 = arith.constant 0.000000e+00 : f32
    %37 = vector.broadcast %cst_12 : f32 to vector<16x1xf32>
    %38 = arith.select %2, %36, %37 : vector<16x1xi1>, vector<16x1xf32>
    %39 = vector.shape_cast %38 : vector<16x1xf32> to vector<1x16x1xf32>
    %cst_13 = arith.constant dense<0.000000e+00> : vector<1xf32>
    %40 = vector.multi_reduction <add>, %39, %cst_13 [1, 2] : vector<1x16x1xf32> to vector<1xf32>
    %41 = vector.shape_cast %40 : vector<1xf32> to vector<1x1x1xf32>
    %42 = vector.extract %41[0, 0, 0] : f32 from vector<1x1x1xf32>
    %43 = arith.extui %2 : vector<16x1xi1> to vector<16x1xi32>
    %44 = arith.sitofp %43 : vector<16x1xi32> to vector<16x1xf32>
    %45 = vector.shape_cast %44 : vector<16x1xf32> to vector<1x16x1xf32>
    %cst_14 = arith.constant dense<0.000000e+00> : vector<1xf32>
    %46 = vector.multi_reduction <add>, %45, %cst_14 [1, 2] : vector<1x16x1xf32> to vector<1xf32>
    %47 = vector.shape_cast %46 : vector<1xf32> to vector<1x1x1xf32>
    %48 = vector.extract %47[0, 0, 0] : f32 from vector<1x1x1xf32>
    %49 = tpu.iota {dimensions = array<i32: 1>} : vector<1x8x128xi32>
    %50 = tpu.iota {dimensions = array<i32: 2>} : vector<1x8x128xi32>
    %c0_i32_15 = arith.constant 0 : i32
    %51 = vector.broadcast %c0_i32_15 : i32 to vector<1x8x128xi32>
    %52 = arith.cmpi eq, %49, %51 : vector<1x8x128xi32>
    %c0_i32_16 = arith.constant 0 : i32
    %53 = vector.broadcast %c0_i32_16 : i32 to vector<1x8x128xi32>
    %54 = arith.cmpi eq, %50, %53 : vector<1x8x128xi32>
    %55 = arith.andi %52, %54 : vector<1x8x128xi1>
    %c1_i32 = arith.constant 1 : i32
    %56 = vector.broadcast %c1_i32 : i32 to vector<1x8x128xi32>
    %57 = arith.cmpi eq, %50, %56 : vector<1x8x128xi32>
    %58 = arith.andi %52, %57 : vector<1x8x128xi1>
    %cst_17 = arith.constant 0.000000e+00 : f32
    %59 = vector.broadcast %48 : f32 to vector<1x8x128xf32>
    %60 = vector.broadcast %cst_17 : f32 to vector<1x8x128xf32>
    %61 = arith.select %58, %59, %60 : vector<1x8x128xi1>, vector<1x8x128xf32>
    %62 = vector.broadcast %42 : f32 to vector<1x8x128xf32>
    %63 = arith.select %55, %62, %61 : vector<1x8x128xi1>, vector<1x8x128xf32>
    %c0_18 = arith.constant 0 : index
    %c0_19 = arith.constant 0 : index
    %c0_20 = arith.constant 0 : index
    %64 = vector.load %arg3[%c0_18, %c0_19, %c0_20] : memref<1x8x128xf32, #tpu.memory_space<vmem>>, vector<1x8x128xf32>
    tpu.vector_store %arg3[%c0_18, %c0_19, %c0_20], %63 {strides = array<i32>} : memref<1x8x128xf32, #tpu.memory_space<vmem>>, vector<1x8x128xf32>,
    return
  }
  func.func @transform_0(%arg0: i32) -> (i32, i32) {
    %c0_i32 = arith.constant 0 : i32
    %c0_i32_0 = arith.constant 0 : i32
    return %arg0, %c0_i32 : i32, i32
  }
  func.func @transform_1(%arg0: i32) -> (i32, i32) {
    %c0_i32 = arith.constant 0 : i32
    %c0_i32_0 = arith.constant 0 : i32
    return %arg0, %c0_i32 : i32, i32
  }
  func.func @transform_2(%arg0: i32) -> (i32, i32, i32) {
    %c0_i32 = arith.constant 0 : i32
    %c0_i32_0 = arith.constant 0 : i32
    %c0_i32_1 = arith.constant 0 : i32
    return %arg0, %c0_i32, %c0_i32_0 : i32, i32, i32
  }
}

</mosaic_0001>

<bundles_post_ra>
// kernel: tpu_custom_call.1
= control target key start
LH: loop header
LB: loop body
LE: loop exit
PB: predicated region body
PF: predicated region fallthrough
CT: control target
= control target key end

     0   :  { %7 = vsyncpa [#allocation3], 0  ;;  %s371_s0 = inlined_call_operand.hbm [shape: bf16[16,32], index: 0, kind: input, shape index: {}]   ;;  %s372_s1 = inlined_call_operand.hbm [shape: s32[16,1], index: 1, kind: input, shape index: {}]   ;;  %s373_s2 = inlined_call_operand.hbm [shape: f32[1,8,128], index: 2, kind: output, shape index: {}]  }
   0x1   :  { %8 = vsyncpa [#allocation6], 0 }
   0x2   :  { %9 = vsyncpa [#allocation4], 0  ;;  %s275_s9 = smov [#allocation2]   ;;  %s203_s13 = scalar_lea.hbm %s371_s0, 128 }
   0x3   :  { %s15_s10 = sshll.u32 %s275_s9, 4  ;;  %p204_p0 = scmp.ne.s32.totalorder %s371_s0, %s203_s13  ;;  %s16_s10 = int_to_ptr.vmem [resolvable:$true] %s15_s10 }
   0x4   :  { %p207_p1 = scmp.lt.u32.totalorder %s203_s13, %s371_s0 }
   0x6   :  { %p209_p2 = pnand %p207_p1, %p204_p0 }
   0x8   :  { %212 = shalt.err (!%p209_p2)
}
   0x9   :  { %s213_s18 = scalar_lea.vmem %s16_s10, 128  ;;  %p218_p4 = scmp.lt.s32.totalorder %s16_s10, %s16_s10 }
   0xa   :  { %p214_p3 = scmp.ne.s32.totalorder %s16_s10, %s213_s18  ;;  %p219_p5 = scmp.lt.s32.totalorder %s213_s18, %s213_s18 }
   0xc   :  { %p220_p6 = por %p219_p5, %p218_p4 }
   0xe   :  { %p221_p7 = pnand %p220_p6, %p214_p3 }
  0x10   :  { %224 = shalt.err (!%p221_p7)
}
  0x11   :  { %s276_s19 = smov 64   ;;  %s277_s20 = smov 4  }
  0x12   :  { %21 = dma.hbm_to_vmem [thread:$0]  %s371_s0, 128, %s16_s10, [#allocation3], %s276_s19, %s276_s19, %s277_s20  }
  0x13   :  { %s278_s23 = smov [#allocation5]   ;;  %s225_s27 = scalar_lea.hbm %s372_s1, 256 }
  0x14   :  { %s27_s24 = sshll.u32 %s278_s23, 4  ;;  %p226_p8 = scmp.ne.s32.totalorder %s372_s1, %s225_s27  ;;  %s28_s24 = int_to_ptr.vmem [resolvable:$true] %s27_s24 }
  0x15   :  { %p229_p9 = scmp.lt.u32.totalorder %s225_s27, %s372_s1 }
  0x17   :  { %p231_p10 = pnand %p229_p9, %p226_p8 }
  0x19   :  { %234 = shalt.err (!%p231_p10)
}
  0x1a   :  { %s235_s4 = scalar_lea.vmem %s28_s24, 256  ;;  %p240_p12 = scmp.lt.s32.totalorder %s28_s24, %s28_s24 }
  0x1b   :  { %p236_p11 = scmp.ne.s32.totalorder %s28_s24, %s235_s4  ;;  %p241_p13 = scmp.lt.s32.totalorder %s235_s4, %s235_s4 }
  0x1d   :  { %p242_p0 = por %p241_p13, %p240_p12 }
  0x1f   :  { %p243_p1 = pnand %p242_p0, %p236_p11 }
  0x21   :  { %246 = shalt.err (!%p243_p1)
}
  0x22   :  { %s279_s0 = smov 128   ;;  %s280_s5 = smov 8  }
  0x23   :  { %33 = dma.hbm_to_vmem [thread:$0]  %s372_s1, 256, %s28_s24, [#allocation6], %s279_s0, %s279_s0, %s280_s5  }
  0x24   :  { %269 = dma.done.wait [#allocation3], 128  }
  0x25   :  { %270 = vsyncadd [#allocation3], 4294967168 }
  0x26   :  { %271 = dma.done.wait [#allocation6], 256  }
  0x27   :  { %272 = vsyncadd [#allocation6], 4294967040  ;;  %v281_v0 = vmov 0   ;;  %v177_v1 = vld [vmem:[#allocation2] sm:$0xff]   ;;  %vm58_vm0 = vcmask 261120   ;;  %v323_v2 = vld [vmem:[#allocation5] sm:$0xff]  ;;  %v46_v12 = vlaneseq }
  0x28   :  { %193 = vset.pattern.permute.xlu1 %v281_v0  ;;  %194 = vset.pattern.permute.xlu0 %v281_v0  ;;  %v178_v3 = vunpack.c.l.bf16 %v177_v1  ;;  %v179_v4 = vunpack.c.h.bf16 %v177_v1  ;;  %v326_v5 = vld [vmem:[#allocation5 + $0x8] sm:$0xff]  ;;  %vm42_vm3 = vcmp.ne.s32.totalorder %v323_v2, 0  ;;  %v282_v28 = vmov 0.0   ;;  %s283_s8 = smov [#allocation7]  }
  0x29   :  { %49 = vperm.xlu1 %193, %v323_v2   ;;  %v332_v15 = vand.u32 127, %v46_v12  ;;  %v174_v29 = vsel %vm42_vm3, 1.0, %v282_v28  ;;  %vm43_vm4 = vcmp.ne.s32.totalorder %v326_v5, 0  ;;  %vm117_vm5 = vcmask 7168   ;;  %s164_s9 = sshll.u32 %s283_s8, 4  ;;  %s165_s9 = int_to_ptr.vmem [resolvable:$true] %s164_s9 }
  0x2a   :  { %v59_v6 = vsel %vm58_vm0, %v178_v3, -inf  ;;  %v62_v7 = vsel %vm58_vm0, %v179_v4, -inf  ;;  %v97_v26 = vsel %vm58_vm0, %v178_v3, 0.0  ;;  %v100_v27 = vsel %vm58_vm0, %v179_v4, 0.0  ;;  %s247_s11 = scalar_lea.vmem %s165_s9, 128  ;;  %p252_p3 = scmp.lt.s32.totalorder %s165_s9, %s165_s9 }
  0x2b   :  { %60 = vmax.xlane.f32.xlu0 %v59_v6  ;;  %v175_v30 = vsel %vm43_vm4, 1.0, %v282_v28  ;;  %v134_v31 = vsel %vm117_vm5, %v174_v29, 0.0  ;;  %vm151_vm7 = vcmp.eq.s32.totalorder %v332_v15, 1  ;;  %vm149_vm8 = vcmp.eq.s32.totalorder %v332_v15, 0  ;;  %p248_p2 = scmp.ne.s32.totalorder %s165_s9, %s247_s11  ;;  %p253_p4 = scmp.lt.s32.totalorder %s247_s11, %s247_s11 }
  0x2c   :  { %v135_v32 = vsel %vm117_vm5, %v175_v30, 0.0 }
  0x2d   :  { %52 = vperm.xlu1 %193, %v326_v5   ;;  %v136_v33 = vadd.f32 %v135_v32, %v134_v31  ;;  %p254_p5 = por %p253_p4, %p252_p3 }
  0x2f   :  { %63 = vmax.xlane.f32.xlu0 %v62_v7  ;;  %p255_p6 = pnand %p254_p5, %p248_p2 }
  0xa8   :  { %v50_v16 = vpop.permute.xlu1 %49 }
  0xa9   :  { %vm54_vm1 = vcmp.eq.s32.totalorder %v332_v15, %v50_v16 }
  0xaa   :  { %v65_v19 = vsel %vm54_vm1, %v178_v3, 0.0 }
  0xab   :  { %v67_v21 = vsel %vm58_vm0, %v65_v19, 0.0 }
  0xac   :  { %v53_v18 = vpop.permute.xlu1 %52 }
  0xad   :  { %vm55_vm2 = vcmp.eq.s32.totalorder %v332_v15, %v53_v18 }
  0xae   :  { %v66_v24 = vsel %vm55_vm2, %v179_v4, 0.0 }
  0xaf   :  { %v70_v25 = vsel %vm58_vm0, %v66_v24, 0.0 }
  0xb8   :  { %v61_v8 = vpop.xlane.xlu0 %60 }
  0xb9   :  { %v73_v9 = vsub.f32 %v178_v3, %v61_v8  ;;  %v103_v39 = vmul.f32 32.0, %v61_v8 }
  0xbb   :  { %v75_v10 = vmul.f32 1.442695, %v73_v9 }
  0xbc   :  { %v64_v11 = vpop.xlane.xlu0 %63 }
  0xbd   :  { %195 = vpow2.f32 %v75_v10  ;;  %v74_v13 = vsub.f32 %v179_v4, %v64_v11  ;;  %v104_v47 = vmul.f32 32.0, %v64_v11 }
  0xbf   :  { %v77_v14 = vmul.f32 1.442695, %v74_v13 }
  0xc1   :  { %197 = vpow2.f32 %v77_v14 }
  0xc7   :  { %v196_v17 = vpop.eup %195 }
  0xc8   :  { %v79_v20 = vsel %vm58_vm0, %v196_v17, 0.0 }
  0xc9   :  { %80 = vadd.xlane.f32.xlu0 %v79_v20 }
  0xcb   :  { %v198_v22 = vpop.eup %197 }
  0xcc   :  { %v82_v23 = vsel %vm58_vm0, %v198_v22, 0.0 }
  0xcd   :  { %83 = vadd.xlane.f32.xlu1 %v82_v23  ;;  %68 = vadd.xlane.f32.xlu0 %v67_v21  ;;  %v147_v21 = vshrl.u32 %v46_v12, 7 }
  0xcf   :  { %vm148_vm6 = vcmp.eq.s32.totalorder %v147_v21, 0 }
  0xd0   :  { %vm152_vm9 = vmand %vm148_vm6, %vm151_vm7 }
  0xd1   :  { %71 = vadd.xlane.f32.xlu0 %v70_v25  ;;  %vm150_vm10 = vmand %vm148_vm6, %vm149_vm8 }
  0xd5   :  { %98 = vadd.xlane.f32.xlu0 %v97_v26 }
  0xd9   :  { %101 = vadd.xlane.f32.xlu0 %v100_v27 }
 0x156   :  { %v81_v34 = vpop.xlane.xlu0 %80 }
 0x157   :  { %199 = vlog2.f32 %v81_v34 }
 0x15a   :  { %v69_v35 = vpop.xlane.xlu0 %68  ;;  %v84_v36 = vpop.xlane.xlu1 %83 }
 0x15b   :  { %201 = vlog2.f32 %v84_v36  ;;  %v89_v41 = vsub.f32 %v69_v35, %v61_v8 }
 0x15e   :  { %v72_v37 = vpop.xlane.xlu0 %71 }
 0x15f   :  { %v90_v50 = vsub.f32 %v72_v37, %v64_v11 }
 0x161   :  { %v200_v38 = vpop.eup %199 }
 0x162   :  { %v86_v40 = vmul.f32 0.6931472, %v200_v38  ;;  %v99_v42 = vpop.xlane.xlu0 %98 }
 0x163   :  { %v105_v43 = vsub.f32 %v99_v42, %v103_v39 }
 0x164   :  { %v91_v44 = vsub.f32 %v89_v41, %v86_v40  ;;  %v107_v45 = vmul.f32 32.0, %v86_v40 }
 0x165   :  { %v202_v46 = vpop.eup %201 }
 0x166   :  { %v93_v48 = vmul.f32 0.8967742, %v91_v44  ;;  %v88_v49 = vmul.f32 0.6931472, %v202_v46  ;;  %v109_v51 = vsub.f32 %v105_v43, %v107_v45  ;;  %v102_v52 = vpop.xlane.xlu0 %101 }
 0x167   :  { %v106_v53 = vsub.f32 %v102_v52, %v104_v47 }
 0x168   :  { %v95_v54 = vsub.f32 -0.6684817, %v93_v48  ;;  %v92_v55 = vsub.f32 %v90_v50, %v88_v49  ;;  %v111_v56 = vmul.f32 0.0032258064, %v109_v51  ;;  %v108_v57 = vmul.f32 32.0, %v88_v49 }
 0x16a   :  { %v94_v58 = vmul.f32 0.8967742, %v92_v55  ;;  %v113_v59 = vsub.f32 %v95_v54, %v111_v56  ;;  %v110_v60 = vsub.f32 %v106_v53, %v108_v57 }
 0x16c   :  { %v96_v61 = vsub.f32 -0.6684817, %v94_v58  ;;  %v112_v62 = vmul.f32 0.0032258064, %v110_v60  ;;  %v115_v0 = vsel %vm42_vm3, %v113_v59, 0.0 }
 0x16d   :  { %v118_v3 = vsel %vm117_vm5, %v115_v0, 0.0 }
 0x16e   :  { %v114_v63 = vsub.f32 %v96_v61, %v112_v62 }
 0x170   :  { %v116_v1 = vsel %vm43_vm4, %v114_v63, 0.0 }
 0x171   :  { %v119_v4 = vsel %vm117_vm5, %v116_v1, 0.0 }
 0x172   :  { %v120_v6 = vadd.f32 %v119_v4, %v118_v3 }
 0x174   :  { %121 = vadd.xlane.f32.xlu0 %v120_v6 }
 0x178   :  { %137 = vadd.xlane.f32.xlu0 %v136_v33 }
 0x201   :  { %v122_v7 = vpop.xlane.xlu0 %121 }
 0x202   :  { %v123_v8 = vrot.slane %v122_v7, 4 }
 0x204   :  { %v124_v9 = vadd.f32 %v123_v8, %v122_v7 }
 0x205   :  { %v138_v10 = vpop.xlane.xlu0 %137 }
 0x206   :  { %v125_v11 = vrot.slane %v124_v9, 2  ;;  %v139_v13 = vrot.slane %v138_v10, 4 }
 0x208   :  { %v140_v14 = vadd.f32 %v139_v13, %v138_v10  ;;  %v126_v16 = vadd.f32 %v125_v11, %v124_v9 }
 0x20a   :  { %v141_v2 = vrot.slane %v140_v14, 2  ;;  %v127_v17 = vrot.slane %v126_v16, 1 }
 0x20c   :  { %v142_v18 = vadd.f32 %v141_v2, %v140_v14  ;;  %v128_v5 = vadd.f32 %v127_v17, %v126_v16 }
 0x20e   :  { %180 = vpush %v128_v5  ;;  %v143_v19 = vrot.slane %v142_v18, 1 }
 0x210   :  { %v144_v20 = vadd.f32 %v143_v19, %v142_v18 }
 0x212   :  { %182 = vpush %v144_v20 }
 0x23f   :  { %s181_s1 = spop %180 }
 0x240   :  { %v155_v23 = vstv %s181_s1 }
 0x243   :  { %s183_s10 = spop %182 }
 0x244   :  { %v153_v22 = vstv %s183_s10 }
 0x245   :  { %v154_v24 = vsel %vm152_vm9, %v153_v22, 0.0 }
 0x246   :  { %v156_v25 = vsel %vm150_vm10, %v155_v23, %v154_v24 }
 0x247   :  { %157 = vst [vmem:[#allocation7] sm:$0xff] %v156_v25 }
 0x248   :  { %258 = shalt.err (!%p255_p6)
}
 0x249   :  { %s259_s14 = scalar_lea.hbm %s373_s2, 128 }
 0x24a   :  { %p260_p7 = scmp.ne.s32.totalorder %s373_s2, %s259_s14  ;;  %p263_p8 = scmp.lt.u32.totalorder %s259_s14, %s373_s2 }
 0x24c   :  { %p265_p9 = pnand %p263_p8, %p260_p7 }
 0x24e   :  { %268 = shalt.err (!%p265_p9)
}
 0x24f   :  { %167 = dma.vmem_to_hbm [thread:$0]  %s165_s9, 128, %s373_s2, [#allocation4]  }
 0x250   :  { %273 = dma.done.wait [#allocation4], 128  }
 0x251   :  { %274 = vsyncadd [#allocation4], 4294967168 }
 0x252   :  { %171 = vsyncpa [#allocation3], 1 }
 0x253   :  { %172 = vsyncpa [#allocation6], 1 }
 0x254   :  { %173 = vsyncpa [#allocation4], 1 }

</bundles_post_ra>
